<compile_context>
chip_gen: v5e
topology: v5e:2x2
jax: 0.10.0
libtpu: 0.0.40
codegen_flags: <defaults>
</compile_context>

<pallas_src>
import functools

import jax
import jax.numpy as jnp
from jax import lax
from jax.experimental import pallas as pl
from jax.experimental.pallas import tpu as pltpu


def _round_up(x, m):
    return ((x + m - 1) // m) * m


def _ce_partial_kernel(x_ref, t_ref, o_ref, *, tile_n, n_total):
    """One row-block: emits the block's sum of picked log-probs.

    x_ref: (tile_n, C) logits in native dtype (bf16 stays bf16 on the VPU)
    t_ref: (tile_n, 1) int32 class indices
    o_ref: (1, 8, 128) f32 -- partial sum broadcast over a lane-dense block
    """
    i = pl.program_id(0)

    x = x_ref[...]                                 # native dtype, no upcast DMA
    tn, c = x.shape

    # Row max + shifted logits at native width; xm reused for pick AND lse.
    m = jnp.max(x, axis=1, keepdims=True)                          # (tn, 1)
    xm = x - m                                                     # (tn, C)

    # Pick xm[r, target[r]] via a pure select (no one-hot matmul, no 0*inf).
    # Exactly one non-zero summand per row; accumulate the reduce in f32.
    # NOTE: out-of-range targets contribute 0 instead of raising like PyTorch.
    col = lax.broadcasted_iota(jnp.int32, (tn, c), 1)
    picked_xm = jnp.sum(jnp.where(col == t_ref[...], xm, jnp.zeros_like(xm)),
                        axis=1, keepdims=True, dtype=jnp.float32)  # (tn, 1)

    # exp / logsumexp accumulation in f32 for numerical safety.
    lse = jnp.log(jnp.sum(jnp.exp(xm.astype(jnp.float32)),
                          axis=1, keepdims=True))                  # (tn, 1)

    picked_logp = picked_xm - lse                                  # (tn, 1)

    # Mask padded tail rows of the last partial block against the true N.
    # Garbage tail rows may yield NaN above; the select never propagates it.
    row = i * tile_n + lax.broadcasted_iota(jnp.int32, (tn, 1), 0)
    partial = jnp.sum(jnp.where(row < n_total, picked_logp, 0.0))  # scalar f32

    o_ref[...] = jnp.full(o_ref.shape, partial, dtype=jnp.float32)


def _vmem_limit_bytes():
    """Generation-aware scoped-VMEM limit: ~3/4 of physical per-core VMEM."""
    cap = 64 * 1024 * 1024                        # conservative default (v7x)
    try:
        info = pltpu.get_tpu_info()
        cap = int(getattr(info, "vmem_capacity_bytes", cap)) or cap
    except Exception:
        pass
    cap = min(max(cap, 32 * 1024 * 1024), 128 * 1024 * 1024)
    return (cap * 3) // 4                         # 48 MiB v7x / 96 MiB v5e,v6e


def _ce_loss_xla(logits, target_1d):
    """Plain-XLA fallback, used only when a minimum tile will not fit VMEM."""
    logp = jax.nn.log_softmax(logits.astype(jnp.float32), axis=1)
    picked = jnp.take_along_axis(logp, target_1d[:, None].astype(jnp.int32),
                                 axis=1)
    return -jnp.mean(picked)


def classification_loss(logits, target, *, tile_rows=None):
    """loss='ce_loss' forward pass.

    logits: (N, C) float array (any float dtype; streamed natively)
    target: integer array whose squeeze() is () or (N,)
    tile_rows: optional override of the row-tile size (testing / tuning)
    returns: scalar float32 loss
    """
    # target.squeeze(); if it becomes a scalar, unsqueeze(0)  (PyTorch behavior)
    target = jnp.squeeze(target)
    if target.ndim == 0:
        target = target[None]
    if target.ndim != 1:
        raise ValueError(
            "target must squeeze to a 0-D or 1-D tensor, got shape "
            f"{target.shape}")
    target = target.astype(jnp.int32).reshape(-1, 1)     # (N, 1) for the kernel

    n, c = logits.shape
    itemsize = jnp.dtype(logits.dtype).itemsize
    # Sublane multiple for packed dtypes: f32 -> 8, bf16 -> 16, int8/fp8 -> 32.
    sub = 8 * max(1, 4 // itemsize)

    # --- VMEM budgeting with the lane-padded class dim --------------------
    c_pad = _round_up(c, 128)
    # Per-row bytes (generous): double-buffered native logits block,
    # double-buffered lane-padded int32 target block (1 -> 128 lanes),
    # ~2 native-width + ~2 f32-width (tile_n, C) temporaries (xm, select,
    # iota, exp), and ~8 lane-padded (tile_n, 1) column temporaries.
    per_row_bytes = (2 * c_pad * itemsize        # pipelined logits input
                     + 2 * 128 * 4               # pipelined targets (padded)
                     + 2 * c_pad * itemsize      # native-width temps
                     + 2 * c_pad * 4             # f32-width temps
                     + 8 * 128 * 4)              # (tile_n, 1) column temps

    vmem_limit = int(_vmem_limit_bytes())
    tile_budget = (vmem_limit * 4) // 5          # headroom for compiler scratch
    rows_fit = tile_budget // per_row_bytes

    if rows_fit < sub and tile_rows is None:
        # Vocab-scale C: even the minimum tile blows the budget.
        # TODO(synk): inner C-tiling / online-softmax; XLA fallback for now.
        return _ce_loss_xla(logits, target[:, 0])

    if tile_rows is not None:
        tile_n = max(1, int(tile_rows))
        auto_tiled = False
    else:
        tile_n = int(rows_fit)
        auto_tiled = True

    if tile_n >= n:
        tile_n = n                               # full-dim block: always legal
    else:
        tile_n = max(sub, (tile_n // sub) * sub)  # sublane-aligned partial tile

    num_blocks = (n + tile_n - 1) // tile_n
    # Keep >= 2 blocks so the "parallel" grid axis can shard across v7x's two
    # TensorCores; one extra ~0.35us grid step is noise on single-TC chips.
    if auto_tiled and num_blocks == 1 and n >= 2 * sub:
        half = _round_up((n + 1) // 2, sub)
        if half < n:
            tile_n = half
            num_blocks = (n + tile_n - 1) // tile_n

    kernel = functools.partial(_ce_partial_kernel, tile_n=tile_n, n_total=n)

    partials = pl.pallas_call(
        kernel,
        out_shape=jax.ShapeDtypeStruct((num_blocks, 8, 128), jnp.float32),
        grid=(num_blocks,),
        in_specs=[
            pl.BlockSpec((tile_n, c), lambda i: (i, 0)),
            pl.BlockSpec((tile_n, 1), lambda i: (i, 0)),
        ],
        out_specs=pl.BlockSpec((1, 8, 128), lambda i: (i, 0, 0)),
        compiler_params=pltpu.CompilerParams(
            dimension_semantics=("parallel",),
            vmem_limit_bytes=vmem_limit,
        ),
        cost_estimate=pl.CostEstimate(
            flops=6 * n * c,
            transcendentals=n * c,
            bytes_accessed=n * c * itemsize + n * 4 + num_blocks * 8 * 128 * 4,
        ),
    )(logits, target)

    # Two-level accumulation (per-block partial -> tiny final sum) on purpose:
    # keeps f32 error bounded for very large N.  Do not "simplify" into one
    # long running sum.
    return -jnp.sum(partials[:, 0, 0]) / jnp.float32(n)


class ClassificationLoss:
    """Mirror of the PyTorch module (ce_loss branch only)."""

    def __init__(self, loss: str = "ce_loss"):
        if loss != "ce_loss":
            # TODO(synk): focal_loss branch not implemented in Pallas.
            raise RuntimeError(
                "Only 'ce_loss' is implemented in the Pallas port, got "
                f"{loss!r}")
        self.loss = loss

    def __call__(self, input, target):
        return classification_loss(input, target)


if __name__ == "__main__":
    key = jax.random.PRNGKey(0)
    k1, k2, k3, k4, k5, k6 = jax.random.split(key, 6)

    loss_mod = ClassificationLoss("ce_loss")

    # Case 1: small single-block, target shaped (N, 1) to exercise .squeeze().
    N, C = 8, 10
    logits = jax.random.normal(k1, (N, C), dtype=jnp.float32)
    target = jax.random.randint(k2, (N, 1), 0, C, dtype=jnp.int32)
    loss = jax.block_until_ready(loss_mod(logits, target))
    lp = jax.nn.log_softmax(logits, axis=1)
    ref = -jnp.mean(lp[jnp.arange(N), jnp.squeeze(target)])
    assert jnp.allclose(loss, ref, atol=1e-5, rtol=1e-5), (loss, ref)

    # Case 2: explicit small tile -> multi-block grid with a partial tail block
    # (exercises tail masking and the pipelined / parallel grid path).
    N2, C2 = 20, 16
    logits2 = jax.random.normal(k3, (N2, C2), dtype=jnp.float32)
    target2 = jax.random.randint(k4, (N2,), 0, C2, dtype=jnp.int32)
    loss2 = jax.block_until_ready(
        classification_loss(logits2, target2, tile_rows=8))
    lp2 = jax.nn.log_softmax(logits2, axis=1)
    ref2 = -jnp.mean(lp2[jnp.arange(N2), target2])
    assert jnp.allclose(loss2, ref2, atol=1e-5, rtol=1e-5), (loss2, ref2)

    # Case 2b: same inputs, automatic tiling (forced >=2-block split + tail mask).
    loss2b = jax.block_until_ready(classification_loss(logits2, target2))
    assert jnp.allclose(loss2b, ref2, atol=1e-5, rtol=1e-5), (loss2b, ref2)

    # Case 3: bf16 logits streamed natively (native-width max/pick, f32 lse).
    N3, C3 = 24, 32
    logits3 = jax.random.normal(k5, (N3, C3), dtype=jnp.bfloat16)
    target3 = jax.random.randint(k6, (N3,), 0, C3, dtype=jnp.int32)
    loss3 = jax.block_until_ready(classification_loss(logits3, target3))
    lp3 = jax.nn.log_softmax(logits3.astype(jnp.float32), axis=1)
    ref3 = -jnp.mean(lp3[jnp.arange(N3), target3])
    assert jnp.allclose(loss3, ref3, atol=5e-2, rtol=5e-2), (loss3, ref3)

    print("KERNEL_OK")
</pallas_src>

<mosaic_0001>
module attributes {stable_mosaic.version = 11 : i64} {
  func.func @_ce_partial_kernel(%arg0: i32, %arg1: memref<8x10xf32, #tpu.memory_space<vmem>>, %arg2: memref<8x1xi32, #tpu.memory_space<vmem>>, %arg3: memref<1x8x128xf32, #tpu.memory_space<vmem>>) attributes {dimension_semantics = [#tpu.dimension_semantics<parallel>], iteration_bounds = array<i64: 1>, scalar_prefetch = 0 : i64, scratch_operands = 0 : i64, tpu.core_type = #tpu.core_type<tc>, window_params = [{transform_indices = @transform_0, window_bounds = array<i64: 8, 10>}, {transform_indices = @transform_1, window_bounds = array<i64: 8, 1>}, {transform_indices = @transform_2, window_bounds = array<i64: 1, 8, 128>}]} {
    %c0 = arith.constant 0 : index
    %c0_0 = arith.constant 0 : index
    %0 = vector.load %arg1[%c0, %c0_0] : memref<8x10xf32, #tpu.memory_space<vmem>>, vector<8x10xf32>
    %cst = arith.constant dense<0xFF800000> : vector<8xf32>
    %1 = vector.multi_reduction <maximumf>, %0, %cst [1] : vector<8x10xf32> to vector<8xf32>
    %2 = vector.shape_cast %1 : vector<8xf32> to vector<8x1xf32>
    %3 = vector.broadcast %2 : vector<8x1xf32> to vector<8x10xf32>
    %4 = arith.subf %0, %3 : vector<8x10xf32>
    %5 = tpu.iota {dimensions = array<i32: 1>} : vector<8x10xi32>
    %c0_1 = arith.constant 0 : index
    %c0_2 = arith.constant 0 : index
    %6 = vector.load %arg2[%c0_1, %c0_2] : memref<8x1xi32, #tpu.memory_space<vmem>>, vector<8x1xi32>
    %7 = vector.broadcast %6 : vector<8x1xi32> to vector<8x10xi32>
    %8 = arith.cmpi eq, %5, %7 : vector<8x10xi32>
    %cst_3 = arith.constant 0.000000e+00 : f32
    %9 = vector.broadcast %cst_3 : f32 to vector<8x10xf32>
    %10 = arith.select %8, %4, %9 : vector<8x10xi1>, vector<8x10xf32>
    %cst_4 = arith.constant dense<0.000000e+00> : vector<8xf32>
    %11 = vector.multi_reduction <add>, %10, %cst_4 [1] : vector<8x10xf32> to vector<8xf32>
    %12 = vector.shape_cast %11 : vector<8xf32> to vector<8x1xf32>
    %13 = math.exp %4 : vector<8x10xf32>
    %cst_5 = arith.constant dense<0.000000e+00> : vector<8xf32>
    %14 = vector.multi_reduction <add>, %13, %cst_5 [1] : vector<8x10xf32> to vector<8xf32>
    %15 = vector.shape_cast %14 : vector<8xf32> to vector<8x1xf32>
    %16 = math.log %15 : vector<8x1xf32>
    %17 = arith.subf %12, %16 : vector<8x1xf32>
    %c8_i32 = arith.constant 8 : i32
    %18 = arith.muli %arg0, %c8_i32 : i32
    %19 = tpu.iota {dimensions = array<i32: 0>} : vector<8x1xi32>
    %20 = vector.broadcast %18 : i32 to vector<8x1xi32>
    %21 = arith.addi %20, %19 : vector<8x1xi32>
    %c8_i32_6 = arith.constant 8 : i32
    %22 = vector.broadcast %c8_i32_6 : i32 to vector<8x1xi32>
    %23 = arith.cmpi slt, %21, %22 : vector<8x1xi32>
    %cst_7 = arith.constant 0.000000e+00 : f32
    %24 = vector.broadcast %cst_7 : f32 to vector<8x1xf32>
    %25 = arith.select %23, %17, %24 : vector<8x1xi1>, vector<8x1xf32>
    %26 = vector.shape_cast %25 : vector<8x1xf32> to vector<1x8x1xf32>
    %cst_8 = arith.constant dense<0.000000e+00> : vector<1xf32>
    %27 = vector.multi_reduction <add>, %26, %cst_8 [1, 2] : vector<1x8x1xf32> to vector<1xf32>
    %28 = vector.shape_cast %27 : vector<1xf32> to vector<1x1x1xf32>
    %29 = vector.extract %28[0, 0, 0] : f32 from vector<1x1x1xf32>
    %30 = vector.broadcast %29 : f32 to vector<1x8x128xf32>
    %c0_9 = arith.constant 0 : index
    %c0_10 = arith.constant 0 : index
    %c0_11 = arith.constant 0 : index
    %31 = vector.load %arg3[%c0_9, %c0_10, %c0_11] : memref<1x8x128xf32, #tpu.memory_space<vmem>>, vector<1x8x128xf32>
    tpu.vector_store %arg3[%c0_9, %c0_10, %c0_11], %30 {strides = array<i32>} : memref<1x8x128xf32, #tpu.memory_space<vmem>>, vector<1x8x128xf32>,
    return
  }
  func.func @transform_0(%arg0: i32) -> (i32, i32) {
    %c0_i32 = arith.constant 0 : i32
    %c0_i32_0 = arith.constant 0 : i32
    return %arg0, %c0_i32 : i32, i32
  }
  func.func @transform_1(%arg0: i32) -> (i32, i32) {
    %c0_i32 = arith.constant 0 : i32
    %c0_i32_0 = arith.constant 0 : i32
    return %arg0, %c0_i32 : i32, i32
  }
  func.func @transform_2(%arg0: i32) -> (i32, i32, i32) {
    %c0_i32 = arith.constant 0 : i32
    %c0_i32_0 = arith.constant 0 : i32
    %c0_i32_1 = arith.constant 0 : i32
    return %arg0, %c0_i32, %c0_i32_0 : i32, i32, i32
  }
}

</mosaic_0001>

<bundles_post_ra>
// kernel: tpu_custom_call.1
= control target key start
LH: loop header
LB: loop body
LE: loop exit
PB: predicated region body
PF: predicated region fallthrough
CT: control target
= control target key end

     0   :  { %vm13_vm0 = vcmask 80896   ;;  %s137_s0 = inlined_call_operand.vmem [shape: f32[8,10], index: 0, kind: input, shape index: {}]   ;;  %s138_s1 = inlined_call_operand.vmem [shape: s32[8,1], index: 1, kind: input, shape index: {}]   ;;  %s139_s2 = inlined_call_operand.hbm [shape: f32[1,8,128], index: 2, kind: output, shape index: {}]  }
   0x1   :  { %v12_v0 = vld [vmem:[%s137_s0] sm:$0xff] }
   0x2   :  { %7 = vsyncpa [#allocation3], 0  ;;  %v14_v1 = vsel %vm13_vm0, %v12_v0, -inf  ;;  %v108_v2 = vmov 0   ;;  %v20_v3 = vld [vmem:[%s138_s1] sm:$0xff]  ;;  %v18_v9 = vlaneseq  ;;  %vm44_vm2 = vcmask 7168  }
   0x3   :  { %77 = vset.pattern.permute.xlu0 %v108_v2  ;;  %s109_s0 = smov [#allocation2]   ;;  %s64_s15 = sshll.u32 %s139_s2, 4  ;;  %s65_s15 = int_to_ptr.hbm [resolvable:$true] %s64_s15 }
   0x4   :  { %15 = vmax.xlane.f32.xlu0 %v14_v1  ;;  %v19_v10 = vand.u32 127, %v18_v9  ;;  %s62_s1 = sshll.u32 %s109_s0, 4  ;;  %s63_s1 = int_to_ptr.vmem [resolvable:$true] %s62_s1 }
  0x18   :  { %22 = vperm.xlu0 %77, %v20_v3  }
  0x77   :  { %v16_v4 = vpop.xlane.xlu0 %15 }
  0x78   :  { %v17_v5 = vsub.f32 %v12_v0, %v16_v4 }
  0x7a   :  { %v29_v6 = vmul.f32 1.442695, %v17_v5 }
  0x7c   :  { %78 = vpow2.f32 %v29_v6 }
  0x82   :  { %v79_v7 = vpop.eup %78 }
  0x83   :  { %v31_v8 = vsel %vm13_vm0, %v79_v7, 0.0 }
  0x84   :  { %32 = vadd.xlane.f32.xlu1 %v31_v8 }
  0x8a   :  { %v23_v11 = vpop.permute.xlu0 %22 }
  0x8b   :  { %vm24_vm1 = vcmp.eq.s32.totalorder %v19_v10, %v23_v11 }
  0x8c   :  { %v25_v12 = vsel %vm24_vm1, %v17_v5, 0.0 }
  0x8d   :  { %v26_v13 = vsel %vm13_vm0, %v25_v12, 0.0 }
  0x8e   :  { %27 = vadd.xlane.f32.xlu1 %v26_v13 }
  0xf7   :  { %v33_v14 = vpop.xlane.xlu1 %32 }
  0xf8   :  { %80 = vlog2.f32 %v33_v14 }
  0xfe   :  { %v81_v15 = vpop.eup %80 }
  0xff   :  { %v35_v16 = vmul.f32 0.6931472, %v81_v15 }
 0x101   :  { %v28_v17 = vpop.xlane.xlu1 %27 }
 0x102   :  { %v36_v18 = vsub.f32 %v28_v17, %v35_v16 }
 0x104   :  { %v45_v19 = vsel %vm44_vm2, %v36_v18, 0.0 }
 0x105   :  { %46 = vadd.xlane.f32.xlu2 %v45_v19 }
 0x178   :  { %v47_v20 = vpop.xlane.xlu2 %46 }
 0x179   :  { %v48_v21 = vrot.slane %v47_v20, 4 }
 0x17b   :  { %v49_v22 = vadd.f32 %v48_v21, %v47_v20 }
 0x17d   :  { %v50_v23 = vrot.slane %v49_v22, 2 }
 0x17f   :  { %v51_v24 = vadd.f32 %v50_v23, %v49_v22 }
 0x181   :  { %v52_v25 = vrot.slane %v51_v24, 1 }
 0x183   :  { %v53_v26 = vadd.f32 %v52_v25, %v51_v24 }
 0x185   :  { %73 = vpush %v53_v26 }
 0x1b6   :  { %s74_s16 = spop %73 }
 0x1b7   :  { %v55_v27 = vstv %s74_s16 }
 0x1b8   :  { %56 = vst [vmem:[#allocation2] sm:$0xff] %v55_v27 }
 0x1b9   :  { %67 = dma.vmem_to_hbm [thread:$0]  %s63_s1, 128, %s65_s15, [#allocation3]  }
 0x1ba   :  { %106 = dma.done.wait [#allocation3], 128  }
 0x1bb   :  { %107 = vsyncadd [#allocation3], 4294967168 }
 0x1bc   :  { %72 = vsyncpa [#allocation3], 1 }

</bundles_post_ra>
